<compile_context>
chip_gen: v5e
topology: v5e:2x2
jax: 0.10.0
libtpu: 0.0.40
codegen_flags: <defaults>
</compile_context>

<pallas_src>
import functools

import jax
import jax.numpy as jnp
from jax.experimental import pallas as pl
from jax.experimental.pallas import tpu as pltpu

_G = 8  # query rows packed per sublane-row (sublane -> lane packing factor)


def _round_up(x, m):
    return (x + m - 1) // m * m


def _inr_kernel(x_ref, sh_ref, w_in_ref, w_h_ref, w_out_ref, b_out_ref, o_ref):
    """Fused modulated-MLP forward for one (batch, row-tile) grid step.

    Everything is "group packed": 8 consecutive query rows share one sublane
    row (concatenated along lanes) and weights are block-diagonal kron(I_8, W),
    so all loads/stores are lane-dense and no in-kernel reshape is needed.

    x_ref     : (tmp, G*q_in)        packed query rows (tmp = tile_rows / G)
    sh_ref    : (depth, G*H)         per-layer shifts for this batch element
                                     (layer biases folded, tiled G x along lanes)
    w_in_ref  : (G*q_in, G*H)        kron(I_G, w_in)
    w_h_ref   : (depth-1, G*H, G*H)  kron(I_G, w_h[l])
    w_out_ref : (G*H, G*out)         kron(I_G, w_out)
    b_out_ref : (1, G*out)
    o_ref     : (tmp, G*out)         packed outputs
    """
    sh = sh_ref[...]                                        # (depth, G*H), one load
    h = jnp.dot(x_ref[...], w_in_ref[...], preferred_element_type=jnp.float32)
    h = jnp.maximum(h + sh[0:1, :], 0.0)
    for l in range(w_h_ref.shape[0]):                       # depth is compile-time
        h = jnp.dot(h, w_h_ref[l], preferred_element_type=jnp.float32)
        h = jnp.maximum(h + sh[l + 1:l + 2, :], 0.0)
    y = jnp.dot(h, w_out_ref[...], preferred_element_type=jnp.float32)
    o_ref[...] = (y + b_out_ref[...]).astype(o_ref.dtype)


def init_emodule_params(key, mdim, pdim, edim, hidden, depth, dtype=jnp.float32):
    """Deterministic synthetic parameters for EModule / ImplicitNeuralModule."""
    assert depth >= 2, "need at least one hidden->hidden layer"
    q_in = mdim + pdim
    out = mdim
    ks = jax.random.split(key, 8)
    s = 0.1
    params = {
        "w_psi": (jax.random.normal(ks[0], (edim, depth * hidden)) * s).astype(dtype),
        "b_psi": jnp.zeros((depth * hidden,), dtype),
        "w_in": (jax.random.normal(ks[1], (q_in, hidden)) * s).astype(dtype),
        "b_in": jnp.zeros((1, hidden), dtype),
        "w_h": (jax.random.normal(ks[2], (depth - 1, hidden, hidden)) * s).astype(dtype),
        "b_h": jnp.zeros((depth - 1, 1, hidden), dtype),
        "w_out": (jax.random.normal(ks[3], (hidden, out)) * s).astype(dtype),
        "b_out": jnp.zeros((1, out), dtype),
    }
    return params


@functools.partial(jax.jit, static_argnames=("tm",))
def emodule_forward(k0, m, params, *, tm=512):
    """EModule.forward: k1 = INR(k0, m).

    k0: (B, N, mdim+pdim) queries
    m : (B, edim)         per-sample modulation latent
    returns (B, N, mdim)
    """
    B, N, q_in = k0.shape
    H = params["w_in"].shape[1]
    depth = params["w_h"].shape[0] + 1
    out_dim = params["w_out"].shape[1]
    dt = params["w_in"].dtype
    G = _G

    # ---- row-tile selection: multiple of 8*G so the packed second-minor dim
    # is a multiple of 8; pad N instead of asserting divisibility.
    tm_eff = min(tm, _round_up(N, G))
    tm_eff = _round_up(tm_eff, 8 * G)
    n_pad = _round_up(N, tm_eff)
    n_tiles = n_pad // tm_eff
    tmp = tm_eff // G                       # packed rows per tile

    # ---- psi: latent -> per-layer additive shifts; fold layer biases in.
    # Tiny matmul, fine as XLA glue outside the kernel.
    shifts = m @ params["w_psi"] + params["b_psi"]            # (B, depth*H)
    shifts = shifts.reshape(B, depth, H)
    layer_bias = jnp.concatenate(
        [params["b_in"].reshape(1, H), params["b_h"].reshape(depth - 1, H)], axis=0)
    shifts = shifts + layer_bias[None]                        # (B, depth, H)
    shifts_packed = jnp.tile(shifts, (1, 1, G))               # (B, depth, G*H)

    # ---- group-pack queries: 8 consecutive rows -> one lane-dense row
    # (row-major reshape in the wrapper, effectively free).
    x = k0
    if n_pad != N:
        x = jnp.pad(x, ((0, 0), (0, n_pad - N), (0, 0)))
    x_packed = x.reshape(B, n_pad // G, G * q_in)

    # ---- block-diagonal (kron(I_G, W)) weights so packed rows stay independent.
    eye_g = jnp.eye(G, dtype=dt)
    w_in_bd = jnp.einsum("ab,ij->aibj", eye_g, params["w_in"]).reshape(G * q_in, G * H)
    w_h_bd = jnp.einsum("ab,lij->laibj", eye_g, params["w_h"]).reshape(
        depth - 1, G * H, G * H)
    w_out_bd = jnp.einsum("ab,ij->aibj", eye_g, params["w_out"]).reshape(
        G * H, G * out_dim)
    b_out_packed = jnp.tile(params["b_out"].reshape(1, out_dim), (1, G))  # (1, G*out)

    out_packed = pl.pallas_call(
        _inr_kernel,
        out_shape=jax.ShapeDtypeStruct((B, n_pad // G, G * out_dim), k0.dtype),
        grid_spec=pltpu.PrefetchScalarGridSpec(
            num_scalar_prefetch=0,
            grid=(B, n_tiles),
            in_specs=[
                # packed queries: one (tmp, G*q_in) tile per (batch, row-tile)
                pl.BlockSpec((None, tmp, G * q_in), lambda b, j: (b, j, 0)),
                # per-batch shifts (tiny, re-DMA'd only when b changes)
                pl.BlockSpec((None, depth, G * H), lambda b, j: (b, 0, 0)),
                # weights: constant index maps -> fetched once, VMEM resident
                pl.BlockSpec((G * q_in, G * H), lambda b, j: (0, 0)),
                pl.BlockSpec((depth - 1, G * H, G * H), lambda b, j: (0, 0, 0)),
                pl.BlockSpec((G * H, G * out_dim), lambda b, j: (0, 0)),
                pl.BlockSpec((1, G * out_dim), lambda b, j: (0, 0)),
            ],
            out_specs=pl.BlockSpec((None, tmp, G * out_dim), lambda b, j: (b, j, 0)),
        ),
        compiler_params=pltpu.CompilerParams(
            dimension_semantics=("parallel", "parallel")),
    )(x_packed, shifts_packed, w_in_bd, w_h_bd, w_out_bd, b_out_packed)

    # unpack: (B, n_pad/G, G*out) --row-major--> (B, n_pad, out) -> crop
    out = out_packed.reshape(B, n_pad, out_dim)[:, :N]
    return out


def emodule_forward_ref(k0, m, params):
    """Pure-JAX reference for correctness checking."""
    B, N, q_in = k0.shape
    H = params["w_in"].shape[1]
    depth = params["w_h"].shape[0] + 1
    shifts = m @ params["w_psi"] + params["b_psi"]           # (B, depth*H)
    shifts = shifts.reshape(B, 1, depth, H)
    h = k0 @ params["w_in"] + params["b_in"] + shifts[:, :, 0]
    h = jax.nn.relu(h)
    for l in range(depth - 1):
        h = h @ params["w_h"][l] + params["b_h"][l] + shifts[:, :, l + 1]
        h = jax.nn.relu(h)
    return h @ params["w_out"] + params["b_out"]


if __name__ == "__main__":
    # Small shapes implied by EModule: mdim + pdim query dim, edim modulation.
    mdim, pdim, edim = 16, 16, 8
    hidden, depth = 32, 3          # inr_params

    key = jax.random.PRNGKey(0)
    kp, kk, km, kk2, km2 = jax.random.split(key, 5)
    params = init_emodule_params(kp, mdim, pdim, edim, hidden, depth)

    # case 1: divisible shapes
    B, N = 2, 128
    k0 = jax.random.normal(kk, (B, N, mdim + pdim), jnp.float32)
    m = jax.random.normal(km, (B, edim), jnp.float32)
    k1 = jax.block_until_ready(emodule_forward(k0, m, params))
    ref = emodule_forward_ref(k0, m, params)
    assert k1.shape == (B, N, mdim)
    assert jnp.allclose(k1, ref, atol=5e-5, rtol=5e-5), "mismatch vs JAX reference (case 1)"

    # case 2: non-multiple N exercises the padding path
    B2, N2 = 3, 100
    k0b = jax.random.normal(kk2, (B2, N2, mdim + pdim), jnp.float32)
    mb = jax.random.normal(km2, (B2, edim), jnp.float32)
    k1b = jax.block_until_ready(emodule_forward(k0b, mb, params))
    refb = emodule_forward_ref(k0b, mb, params)
    assert k1b.shape == (B2, N2, mdim)
    assert jnp.allclose(k1b, refb, atol=5e-5, rtol=5e-5), "mismatch vs JAX reference (case 2)"

    print("KERNEL_OK")
</pallas_src>

<mosaic_0001>
module attributes {stable_mosaic.version = 11 : i64} {
  func.func @_inr_kernel(%arg0: i32, %arg1: i32, %arg2: memref<1x16x256xf32, #tpu.memory_space<vmem>>, %arg3: memref<1x3x256xf32, #tpu.memory_space<vmem>>, %arg4: memref<256x256xf32, #tpu.memory_space<vmem>>, %arg5: memref<2x256x256xf32, #tpu.memory_space<vmem>>, %arg6: memref<256x128xf32, #tpu.memory_space<vmem>>, %arg7: memref<1x128xf32, #tpu.memory_space<vmem>>, %arg8: memref<1x16x128xf32, #tpu.memory_space<vmem>>) attributes {dimension_semantics = [#tpu.dimension_semantics<parallel>, #tpu.dimension_semantics<parallel>], iteration_bounds = array<i64: 2, 1>, scalar_prefetch = 0 : i64, scratch_operands = 0 : i64, tpu.core_type = #tpu.core_type<tc>, window_params = [{transform_indices = @transform_0, window_bounds = array<i64: 1, 16, 256>}, {transform_indices = @transform_1, window_bounds = array<i64: 1, 3, 256>}, {pipeline_mode = #tpu.pipeline_mode<synchronous>, transform_indices = @transform_2, window_bounds = array<i64: 256, 256>}, {pipeline_mode = #tpu.pipeline_mode<synchronous>, transform_indices = @transform_3, window_bounds = array<i64: 2, 256, 256>}, {pipeline_mode = #tpu.pipeline_mode<synchronous>, transform_indices = @transform_4, window_bounds = array<i64: 256, 128>}, {pipeline_mode = #tpu.pipeline_mode<synchronous>, transform_indices = @transform_5, window_bounds = array<i64: 1, 128>}, {transform_indices = @transform_6, window_bounds = array<i64: 1, 16, 128>}]} {
    %c0 = arith.constant 0 : index
    %c0_0 = arith.constant 0 : index
    %c0_1 = arith.constant 0 : index
    %0 = vector.load %arg3[%c0, %c0_0, %c0_1] : memref<1x3x256xf32, #tpu.memory_space<vmem>>, vector<1x3x256xf32>
    %1 = vector.shape_cast %0 : vector<1x3x256xf32> to vector<3x256xf32>
    %c0_2 = arith.constant 0 : index
    %c0_3 = arith.constant 0 : index
    %c0_4 = arith.constant 0 : index
    %2 = vector.load %arg2[%c0_2, %c0_3, %c0_4] : memref<1x16x256xf32, #tpu.memory_space<vmem>>, vector<1x16x256xf32>
    %3 = vector.shape_cast %2 : vector<1x16x256xf32> to vector<16x256xf32>
    %c0_5 = arith.constant 0 : index
    %c0_6 = arith.constant 0 : index
    %4 = vector.load %arg4[%c0_5, %c0_6] : memref<256x256xf32, #tpu.memory_space<vmem>>, vector<256x256xf32>
    %cst = arith.constant dense<0.000000e+00> : vector<16x256xf32>
    %5 = tpu.matmul %3, %4, %cst {dimension_numbers = #tpu.dot_dimension_numbers<[1], [0], [0], [1], [0, 0, 1, 1], [], []>} : vector<16x256xf32>, vector<256x256xf32>, vector<16x256xf32> -> vector<16x256xf32>
    %6 = vector.extract_strided_slice %1 {offsets = [0, 0], sizes = [1, 256], strides = [1, 1]} : vector<3x256xf32> to vector<1x256xf32>
    %7 = vector.broadcast %6 : vector<1x256xf32> to vector<16x256xf32>
    %8 = arith.addf %5, %7 : vector<16x256xf32>
    %cst_7 = arith.constant 0.000000e+00 : f32
    %9 = vector.broadcast %cst_7 : f32 to vector<16x256xf32>
    %10 = arith.maximumf %8, %9 : vector<16x256xf32>
    %c0_8 = arith.constant 0 : index
    %c0_9 = arith.constant 0 : index
    %c0_10 = arith.constant 0 : index
    %11 = vector.load %arg5[%c0_8, %c0_9, %c0_10] : memref<2x256x256xf32, #tpu.memory_space<vmem>>, vector<1x256x256xf32>
    %12 = vector.shape_cast %11 : vector<1x256x256xf32> to vector<256x256xf32>
    %cst_11 = arith.constant dense<0.000000e+00> : vector<16x256xf32>
    %13 = tpu.matmul %10, %12, %cst_11 {dimension_numbers = #tpu.dot_dimension_numbers<[1], [0], [0], [1], [0, 0, 1, 1], [], []>} : vector<16x256xf32>, vector<256x256xf32>, vector<16x256xf32> -> vector<16x256xf32>
    %14 = vector.extract_strided_slice %1 {offsets = [1, 0], sizes = [1, 256], strides = [1, 1]} : vector<3x256xf32> to vector<1x256xf32>
    %15 = vector.broadcast %14 : vector<1x256xf32> to vector<16x256xf32>
    %16 = arith.addf %13, %15 : vector<16x256xf32>
    %cst_12 = arith.constant 0.000000e+00 : f32
    %17 = vector.broadcast %cst_12 : f32 to vector<16x256xf32>
    %18 = arith.maximumf %16, %17 : vector<16x256xf32>
    %c1 = arith.constant 1 : index
    %c0_13 = arith.constant 0 : index
    %c0_14 = arith.constant 0 : index
    %19 = vector.load %arg5[%c1, %c0_13, %c0_14] : memref<2x256x256xf32, #tpu.memory_space<vmem>>, vector<1x256x256xf32>
    %20 = vector.shape_cast %19 : vector<1x256x256xf32> to vector<256x256xf32>
    %cst_15 = arith.constant dense<0.000000e+00> : vector<16x256xf32>
    %21 = tpu.matmul %18, %20, %cst_15 {dimension_numbers = #tpu.dot_dimension_numbers<[1], [0], [0], [1], [0, 0, 1, 1], [], []>} : vector<16x256xf32>, vector<256x256xf32>, vector<16x256xf32> -> vector<16x256xf32>
    %22 = vector.extract_strided_slice %1 {offsets = [2, 0], sizes = [1, 256], strides = [1, 1]} : vector<3x256xf32> to vector<1x256xf32>
    %23 = vector.broadcast %22 : vector<1x256xf32> to vector<16x256xf32>
    %24 = arith.addf %21, %23 : vector<16x256xf32>
    %cst_16 = arith.constant 0.000000e+00 : f32
    %25 = vector.broadcast %cst_16 : f32 to vector<16x256xf32>
    %26 = arith.maximumf %24, %25 : vector<16x256xf32>
    %c0_17 = arith.constant 0 : index
    %c0_18 = arith.constant 0 : index
    %27 = vector.load %arg6[%c0_17, %c0_18] : memref<256x128xf32, #tpu.memory_space<vmem>>, vector<256x128xf32>
    %cst_19 = arith.constant dense<0.000000e+00> : vector<16x128xf32>
    %28 = tpu.matmul %26, %27, %cst_19 {dimension_numbers = #tpu.dot_dimension_numbers<[1], [0], [0], [1], [0, 0, 1, 1], [], []>} : vector<16x256xf32>, vector<256x128xf32>, vector<16x128xf32> -> vector<16x128xf32>
    %c0_20 = arith.constant 0 : index
    %c0_21 = arith.constant 0 : index
    %29 = vector.load %arg7[%c0_20, %c0_21] : memref<1x128xf32, #tpu.memory_space<vmem>>, vector<1x128xf32>
    %30 = vector.broadcast %29 : vector<1x128xf32> to vector<16x128xf32>
    %31 = arith.addf %28, %30 : vector<16x128xf32>
    %c0_22 = arith.constant 0 : index
    %c0_23 = arith.constant 0 : index
    %c0_24 = arith.constant 0 : index
    %32 = vector.load %arg8[%c0_22, %c0_23, %c0_24] : memref<1x16x128xf32, #tpu.memory_space<vmem>>, vector<1x16x128xf32>
    %33 = vector.shape_cast %32 : vector<1x16x128xf32> to vector<16x128xf32>
    %34 = vector.shape_cast %31 : vector<16x128xf32> to vector<1x16x128xf32>
    tpu.vector_store %arg8[%c0_22, %c0_23, %c0_24], %34 {strides = array<i32>} : memref<1x16x128xf32, #tpu.memory_space<vmem>>, vector<1x16x128xf32>,
    return
  }
  func.func @transform_0(%arg0: i32, %arg1: i32) -> (i32, i32, i32) {
    %c0_i32 = arith.constant 0 : i32
    %c0_i32_0 = arith.constant 0 : i32
    return %arg0, %arg1, %c0_i32 : i32, i32, i32
  }
  func.func @transform_1(%arg0: i32, %arg1: i32) -> (i32, i32, i32) {
    %c0_i32 = arith.constant 0 : i32
    %c0_i32_0 = arith.constant 0 : i32
    %c0_i32_1 = arith.constant 0 : i32
    return %arg0, %c0_i32, %c0_i32_0 : i32, i32, i32
  }
  func.func @transform_2(%arg0: i32, %arg1: i32) -> (i32, i32) {
    %c0_i32 = arith.constant 0 : i32
    %c0_i32_0 = arith.constant 0 : i32
    %c0_i32_1 = arith.constant 0 : i32
    return %c0_i32, %c0_i32_0 : i32, i32
  }
  func.func @transform_3(%arg0: i32, %arg1: i32) -> (i32, i32, i32) {
    %c0_i32 = arith.constant 0 : i32
    %c0_i32_0 = arith.constant 0 : i32
    %c0_i32_1 = arith.constant 0 : i32
    %c0_i32_2 = arith.constant 0 : i32
    return %c0_i32, %c0_i32_0, %c0_i32_1 : i32, i32, i32
  }
  func.func @transform_4(%arg0: i32, %arg1: i32) -> (i32, i32) {
    %c0_i32 = arith.constant 0 : i32
    %c0_i32_0 = arith.constant 0 : i32
    %c0_i32_1 = arith.constant 0 : i32
    return %c0_i32, %c0_i32_0 : i32, i32
  }
  func.func @transform_5(%arg0: i32, %arg1: i32) -> (i32, i32) {
    %c0_i32 = arith.constant 0 : i32
    %c0_i32_0 = arith.constant 0 : i32
    %c0_i32_1 = arith.constant 0 : i32
    return %c0_i32, %c0_i32_0 : i32, i32
  }
  func.func @transform_6(%arg0: i32, %arg1: i32) -> (i32, i32, i32) {
    %c0_i32 = arith.constant 0 : i32
    %c0_i32_0 = arith.constant 0 : i32
    return %arg0, %arg1, %c0_i32 : i32, i32, i32
  }
}

</mosaic_0001>

<bundles_post_ra>
// kernel: tile.14
= control target key start
LH: loop header
LB: loop body
LE: loop exit
PB: predicated region body
PF: predicated region fallthrough
CT: control target
= control target key end

     0   :  { %vm22_vm0 = vcmask 1047556   ;;  %s147_s14 = smov 96   ;;  %s148_s17 = smov 64   ;;  %vm3_vm1 = vcmask 261120   ;;  %vm26_vm2 = vcmask 1048320   ;;  %vm51_vm3 = vcmask 785920   ;;  %s229_s0 = inlined_call_operand.vmem [shape: f32[2,3,8,32], index: 0, kind: input, shape index: {}]   ;;  %s230_s1 = inlined_call_operand.vmem [shape: f32[2,3,256], index: 1, kind: output, shape index: {}]  }
   0x1   :  { %v130_v0 = vld.sshfl [vmem:[%s229_s0 + $0x3] sm:$0xff pattern:$0xccccc480]   ;;  %v131_v1 = vld.sshfl [vmem:[%s229_s0 + $0x13] sm:$0xff pattern:$0xc4800000]  }
   0x2   :  { %v133_v2 = vld.sshfl [vmem:[%s229_s0 + $0x2] sm:$0xff pattern:$0xccccc480]   ;;  %v23_v3 = vsel %vm22_vm0, %v131_v1, %v130_v0  ;;  %v134_v4 = vld.sshfl [vmem:[%s229_s0 + $0x12] sm:$0xff pattern:$0xc4800000]  }
   0x3   :  { %24 = vrot.lane.b32.xlu0 %v23_v3, %s147_s14  ;;  %v48_v5 = vsel %vm22_vm0, %v134_v4, %v133_v2  ;;  %v136_v6 = vld.sshfl [vmem:[%s229_s0 + $0x1] sm:$0xff pattern:$0xccccc480]   ;;  %v137_v7 = vld.sshfl [vmem:[%s229_s0 + $0x11] sm:$0xff pattern:$0xc4800000]  }
   0x4   :  { %49 = vrot.lane.b32.xlu1 %v48_v5, %s148_s17  ;;  %v73_v8 = vsel %vm22_vm0, %v137_v7, %v136_v6  ;;  %s149_s20 = smov 32   ;;  %v132_v9 = vld.sshfl [vmem:[%s229_s0 + $0x23] sm:$0xff pattern:$0xccccc480]   ;;  %v2_v12 = vld [vmem:[%s229_s0] ss:$4 sm:$0xff]  }
   0x5   :  { %74 = vrot.lane.b32.xlu2 %v73_v8, %s149_s20  ;;  %v135_v10 = vld.sshfl [vmem:[%s229_s0 + $0x22] sm:$0xff pattern:$0xccccc480]   ;;  %v138_v11 = vld.sshfl [vmem:[%s229_s0 + $0x21] sm:$0xff pattern:$0xccccc480]  }
   0x6   :  { %4 = vst.msk [vmem:[#allocation0] ss:$8 sm:$0x3] %vm3_vm1, %v2_v12   ;;  %v129_v14 = vld [vmem:[%s229_s0 + $0x20] ss:$4 sm:$0xf]  }
   0x7   :  { %6 = vst.msk [vmem:[#allocation0 - $0xf] ss:$8 sm:$0xc] %vm3_vm1, %v2_v12   ;;  %vm76_vm4 = vcmask 523520  }
   0x8   :  { %8 = vst.msk [vmem:[#allocation0 - $0x10] ss:$8 sm:$0x30] %vm3_vm1, %v2_v12  }
   0x9   :  { %10 = vst.msk [vmem:[#allocation0 - $0x1f] ss:$8 sm:$0xc0] %vm3_vm1, %v2_v12  }
   0xa   :  { %15 = vst.msk [vmem:[#allocation0 + $0x20] ss:$8 sm:$0x3] %vm3_vm1, %v129_v14  }
   0xb   :  { %36 = vrot.lane.b32.xlu0 %v132_v9, %s147_s14  ;;  %17 = vst.msk [vmem:[#allocation0 + $0x11] ss:$8 sm:$0xc] %vm3_vm1, %v129_v14  }
   0xc   :  { %61 = vrot.lane.b32.xlu1 %v135_v10, %s148_s17 }
   0xd   :  { %86 = vrot.lane.b32.xlu2 %v138_v11, %s149_s20 }
  0x5f   :  { %v75_v13 = vpop.permute.xlu2 %74  }
  0x67   :  { %v87_v15 = vpop.permute.xlu2 %86  }
  0x75   :  { %v25_v16 = vpop.permute.xlu0 %24  }
  0x76   :  { %27 = vst.msk [vmem:[#allocation0] sm:$0x3] %vm26_vm2, %v25_v16   ;;  %v50_v17 = vpop.permute.xlu1 %49  }
  0x77   :  { %29 = vst.msk [vmem:[#allocation0 + $0x6] sm:$0xc] %vm26_vm2, %v25_v16  }
  0x78   :  { %31 = vst.msk [vmem:[#allocation0 + $0xc] sm:$0x30] %vm26_vm2, %v25_v16  }
  0x79   :  { %33 = vst.msk [vmem:[#allocation0 + $0x12] sm:$0xc0] %vm26_vm2, %v25_v16  }
  0x7a   :  { %52 = vst.msk [vmem:[#allocation0] sm:$0x3] %vm51_vm3, %v50_v17  }
  0x7b   :  { %54 = vst.msk [vmem:[#allocation0 + $0x6] sm:$0xc] %vm51_vm3, %v50_v17  }
  0x7c   :  { %56 = vst.msk [vmem:[#allocation0 + $0xc] sm:$0x30] %vm51_vm3, %v50_v17  }
  0x7d   :  { %58 = vst.msk [vmem:[#allocation0 + $0x12] sm:$0xc0] %vm51_vm3, %v50_v17   ;;  %v37_v18 = vpop.permute.xlu0 %36  }
  0x7e   :  { %77 = vst.msk [vmem:[#allocation0] sm:$0x3] %vm76_vm4, %v75_v13   ;;  %v62_v19 = vpop.permute.xlu1 %61  }
  0x7f   :  { %79 = vst.msk [vmem:[#allocation0 + $0x6] sm:$0xc] %vm76_vm4, %v75_v13  }
  0x80   :  { %81 = vst.msk [vmem:[#allocation0 + $0xc] sm:$0x30] %vm76_vm4, %v75_v13  }
  0x81   :  { %83 = vst.msk [vmem:[#allocation0 + $0x12] sm:$0xc0] %vm76_vm4, %v75_v13  }
  0x82   :  { %40 = vst.msk [vmem:[#allocation0 + $0x20] sm:$0x3] %vm26_vm2, %v37_v18  }
  0x83   :  { %42 = vst.msk [vmem:[#allocation0 + $0x26] sm:$0xc] %vm26_vm2, %v37_v18  }
  0x84   :  { %65 = vst.msk [vmem:[#allocation0 + $0x20] sm:$0x3] %vm51_vm3, %v62_v19  }
  0x85   :  { %v95_v20 = vld [vmem:[#allocation0] sm:$0x3]  ;;  %67 = vst.msk [vmem:[#allocation0 + $0x26] sm:$0xc] %vm51_vm3, %v62_v19  }
  0x86   :  { %98 = vst [vmem:[%s230_s1] sm:$0x3] %v95_v20  ;;  %v100_v21 = vld [vmem:[#allocation0 + $0x8] sm:$0x3] }
  0x87   :  { %139 = vst [vmem:[%s230_s1 + $0x2] sm:$0x3] %v100_v21  ;;  %v106_v22 = vld [vmem:[#allocation0 + $0x10] sm:$0x3] }
  0x88   :  { %140 = vst [vmem:[%s230_s1 + $0x4] sm:$0x3] %v106_v22  ;;  %v112_v23 = vld [vmem:[#allocation0 + $0x18] sm:$0x3] }
  0x89   :  { %141 = vst [vmem:[%s230_s1 + $0x6] sm:$0x3] %v112_v23 }
  0x8a   :  { %90 = vst.msk [vmem:[#allocation0 + $0x20] sm:$0x3] %vm76_vm4, %v87_v15  }
  0x8b   :  { %92 = vst.msk [vmem:[#allocation0 + $0x26] sm:$0xc] %vm76_vm4, %v87_v15  }
  0x91   :  { %v118_v24 = vld [vmem:[#allocation0 + $0x20] sm:$0x3] }
  0x92   :  { %142 = vst [vmem:[%s230_s1 + $0x8] sm:$0x3] %v118_v24  ;;  %v124_v25 = vld [vmem:[#allocation0 + $0x28] sm:$0x3] }
  0x93   :  { %143 = vst [vmem:[%s230_s1 + $0xa] sm:$0x3] %v124_v25 }

// kernel: emodule_forward.1
= control target key start
LH: loop header
LB: loop body
LE: loop exit
PB: predicated region body
PF: predicated region fallthrough
CT: control target
= control target key end

     0   :  { %s1201_s21 = smov 0   ;;  %s1203_s22 = smov 0   ;;  %s1937_s0 = inlined_call_operand.vmem [shape: f32[2,16,256], index: 0, kind: input, shape index: {}]   ;;  %s1938_s1 = inlined_call_operand.vmem [shape: f32[2,3,256], index: 1, kind: input, shape index: {}]   ;;  %s1939_s2 = inlined_call_operand.vmem [shape: f32[256,256], index: 2, kind: input, shape index: {}]   ;;  %s1940_s3 = inlined_call_operand.vmem [shape: f32[2,256,256], index: 3, kind: input, shape index: {}]   ;;  %s1941_s4 = inlined_call_operand.vmem [shape: f32[256,128], index: 4, kind: input, shape index: {}]   ;;  %s1942_s5 = inlined_call_operand.vmem [shape: f32[1,128], index: 5, kind: input, shape index: {}]   ;;  %s1943_s6 = inlined_call_operand.vmem [shape: f32[2,16,128], index: 6, kind: output, shape index: {}]  }
   0x1   :  { %s1205_s23 = smov 0  }
   0x2 LB: > { %s28_s24 = sadd.s32 1, %s1160_s22  ;;  %p1009_p0 = scmp.ge.s32.totalorder %s1164_s23, 1  ;;  %s1164_s23 = sphi %s1205_s23, %s16_s23   ;;  %s1160_s22 = sphi %s1203_s22, %s1945_s22   ;;  %s1156_s21 = sphi %s1201_s21, %s1944_s21  }
   0x3   : > { %p30_p1 = scmp.ge.s32.totalorder %s28_s24, 2  ;;  %p244_p2 = scmp.lt.s32.totalorder %s1164_s23, 3 }
   0x5   : > { %s1947_s24 = smov (%p30_p1, %s28_s24), 0  ;;  %p245_p3 = pnand %p1009_p0, %p244_p2 }
   0x6   : > { %p289_p4 = scmp.lt.s32.totalorder (!%p245_p3), %s1156_s21, 1 }
   0x7   : > { %248 = sbr.rel (%p245_p3) target bundleno = 597 (0x255), region = 44 }
   0xc   : > { %v350_v0 = vld [vmem:[%s1939_s2 + $0xf8] sm:$0xff]  ;;  %v348_v1 = vld [vmem:[%s1939_s2 + $0xe8] sm:$0xff]  ;;  %v349_v3 = vld [vmem:[%s1939_s2 + $0xf0] sm:$0xff]  ;;  %s1949_s21 = smov (!%p289_p4, %s1156_s21), 1 }
   0xd   : > { %v382_v2 = vld [vmem:[%s1939_s2 + $0x1f8] sm:$0xff]  ;;  %436 = vmatpush.msra.mxu2 %v350_v0  ;;  %v380_v4 = vld [vmem:[%s1939_s2 + $0x1e8] sm:$0xff]  ;;  %390 = vmatpush.msra.mxu0 %v349_v3  ;;  %v347_v6 = vld [vmem:[%s1939_s2 + $0xe0] sm:$0xff]  ;;  %s1082_s27 = sshll.u32 %s1949_s21, 5  ;;  %s1083_s26 = sshll.u32 %s1949_s21, 3 }
   0xe   : > { %459 = vmatpush.msra.mxu3 %v382_v2  ;;  %v346_v5 = vld [vmem:[%s1939_s2 + $0xd8] sm:$0xff]  ;;  %v381_v7 = vld [vmem:[%s1939_s2 + $0x1f0] sm:$0xff]  ;;  %v379_v10 = vld [vmem:[%s1939_s2 + $0x1e0] sm:$0xff]  ;;  %s1402_s18 = scalar_lea.vmem %s1937_s0, %s1082_s27  ;;  %s303_s27 = scalar_lea.vmem %s1938_s1, %s1083_s26 }
   0xf   : > { %437 = vmatpush.msra.mxu2 %v348_v1  ;;  %v378_v8 = vld [vmem:[%s1939_s2 + $0x1d8] sm:$0xff]  ;;  %v345_v9 = vld [vmem:[%s1939_s2 + $0xd0] sm:$0xff]  ;;  %391 = vmatpush.msra.mxu0 %v347_v6  ;;  %v344_v11 = vld [vmem:[%s1939_s2 + $0xc8] sm:$0xff]  ;;  %s1084_s20 = sshll.u32 %s1949_s21, 4 }
  0x10   : > { %460 = vmatpush.msra.mxu3 %v380_v4  ;;  %413 = vmatpush.msra.mxu1 %v381_v7  ;;  %v376_v12 = vld [vmem:[%s1939_s2 + $0x1c8] sm:$0xff]  ;;  %v343_v13 = vld [vmem:[%s1939_s2 + $0xc0] sm:$0xff]  ;;  %v377_v14 = vld [vmem:[%s1939_s2 + $0x1d0] sm:$0xff]  ;;  %s312_s28 = scalar_lea.vmem %s1943_s6, %s1084_s20 }
  0x11   : > { %438 = vmatpush.msra.mxu2 %v346_v5  ;;  %392 = vmatpush.msra.mxu0 %v345_v9  ;;  %v342_v15 = vld [vmem:[%s1939_s2 + $0xb8] sm:$0xff]  ;;  %v341_v17 = vld [vmem:[%s1939_s2 + $0xb0] sm:$0xff]  ;;  %v375_v18 = vld [vmem:[%s1939_s2 + $0x1c0] sm:$0xff] }
  0x12   : > { %461 = vmatpush.msra.mxu3 %v378_v8  ;;  %414 = vmatpush.msra.mxu1 %v379_v10  ;;  %v374_v16 = vld [vmem:[%s1939_s2 + $0x1b8] sm:$0xff]  ;;  %v340_v19 = vld [vmem:[%s1939_s2 + $0xa8] sm:$0xff]  ;;  %v339_v21 = vld [vmem:[%s1939_s2 + $0xa0] sm:$0xff] }
  0x13   : > { %439 = vmatpush.msra.mxu2 %v344_v11  ;;  %393 = vmatpush.msra.mxu0 %v343_v13  ;;  %v372_v20 = vld [vmem:[%s1939_s2 + $0x1a8] sm:$0xff]  ;;  %v373_v22 = vld [vmem:[%s1939_s2 + $0x1b0] sm:$0xff]  ;;  %v338_v23 = vld [vmem:[%s1939_s2 + $0x98] sm:$0xff] }
  0x14   : > { %462 = vmatpush.msra.mxu3 %v376_v12  ;;  %415 = vmatpush.msra.mxu1 %v377_v14  ;;  %v370_v24 = vld [vmem:[%s1939_s2 + $0x198] sm:$0xff]  ;;  %v337_v25 = vld [vmem:[%s1939_s2 + $0x90] sm:$0xff]  ;;  %v371_v26 = vld [vmem:[%s1939_s2 + $0x1a0] sm:$0xff] }
  0x15   : > { %440 = vmatpush.msra.mxu2 %v342_v15  ;;  %394 = vmatpush.msra.mxu0 %v341_v17  ;;  %v336_v27 = vld [vmem:[%s1939_s2 + $0x88] sm:$0xff]  ;;  %v335_v29 = vld [vmem:[%s1939_s2 + $0x80] sm:$0xff]  ;;  %v369_v30 = vld [vmem:[%s1939_s2 + $0x190] sm:$0xff] }
  0x16   : > { %463 = vmatpush.msra.mxu3 %v374_v16  ;;  %416 = vmatpush.msra.mxu1 %v375_v18  ;;  %v368_v28 = vld [vmem:[%s1939_s2 + $0x188] sm:$0xff]  ;;  %v334_v31 = vld [vmem:[%s1939_s2 + $0x78] sm:$0xff]  ;;  %v333_v33 = vld [vmem:[%s1939_s2 + $0x70] sm:$0xff] }
  0x17   : > { %441 = vmatpush.msra.mxu2 %v340_v19  ;;  %395 = vmatpush.msra.mxu0 %v339_v21  ;;  %v366_v32 = vld [vmem:[%s1939_s2 + $0x178] sm:$0xff]  ;;  %v367_v34 = vld [vmem:[%s1939_s2 + $0x180] sm:$0xff]  ;;  %v332_v35 = vld [vmem:[%s1939_s2 + $0x68] sm:$0xff] }
  0x18   : > { %464 = vmatpush.msra.mxu3 %v372_v20  ;;  %417 = vmatpush.msra.mxu1 %v373_v22  ;;  %v364_v36 = vld [vmem:[%s1939_s2 + $0x168] sm:$0xff]  ;;  %v331_v37 = vld [vmem:[%s1939_s2 + $0x60] sm:$0xff]  ;;  %v365_v38 = vld [vmem:[%s1939_s2 + $0x170] sm:$0xff] }
  0x19   : > { %442 = vmatpush.msra.mxu2 %v338_v23  ;;  %396 = vmatpush.msra.mxu0 %v337_v25  ;;  %v330_v39 = vld [vmem:[%s1939_s2 + $0x58] sm:$0xff]  ;;  %v329_v41 = vld [vmem:[%s1939_s2 + $0x50] sm:$0xff]  ;;  %v363_v42 = vld [vmem:[%s1939_s2 + $0x160] sm:$0xff] }
  0x1a   : > { %465 = vmatpush.msra.mxu3 %v370_v24  ;;  %418 = vmatpush.msra.mxu1 %v371_v26  ;;  %v362_v40 = vld [vmem:[%s1939_s2 + $0x158] sm:$0xff]  ;;  %v328_v43 = vld [vmem:[%s1939_s2 + $0x48] sm:$0xff]  ;;  %v327_v45 = vld [vmem:[%s1939_s2 + $0x40] sm:$0xff] }
  0x1b   : > { %443 = vmatpush.msra.mxu2 %v336_v27  ;;  %397 = vmatpush.msra.mxu0 %v335_v29  ;;  %v360_v44 = vld [vmem:[%s1939_s2 + $0x148] sm:$0xff]  ;;  %v361_v46 = vld [vmem:[%s1939_s2 + $0x150] sm:$0xff]  ;;  %v326_v47 = vld [vmem:[%s1939_s2 + $0x38] sm:$0xff] }
  0x1c   : > { %466 = vmatpush.msra.mxu3 %v368_v28  ;;  %419 = vmatpush.msra.mxu1 %v369_v30  ;;  %v358_v48 = vld [vmem:[%s1939_s2 + $0x138] sm:$0xff]  ;;  %v325_v49 = vld [vmem:[%s1939_s2 + $0x30] sm:$0xff]  ;;  %v359_v50 = vld [vmem:[%s1939_s2 + $0x140] sm:$0xff] }
  0x1d   : > { %444 = vmatpush.msra.mxu2 %v334_v31  ;;  %398 = vmatpush.msra.mxu0 %v333_v33  ;;  %v324_v51 = vld [vmem:[%s1939_s2 + $0x28] sm:$0xff]  ;;  %v323_v53 = vld [vmem:[%s1939_s2 + $0x20] sm:$0xff]  ;;  %v357_v54 = vld [vmem:[%s1939_s2 + $0x130] sm:$0xff] }
  0x1e   : > { %467 = vmatpush.msra.mxu3 %v366_v32  ;;  %420 = vmatpush.msra.mxu1 %v367_v34  ;;  %v356_v52 = vld [vmem:[%s1939_s2 + $0x128] sm:$0xff]  ;;  %v322_v55 = vld [vmem:[%s1939_s2 + $0x18] sm:$0xff]  ;;  %v321_v57 = vld [vmem:[%s1939_s2 + $0x10] sm:$0xff] }
  0x1f   : > { %445 = vmatpush.msra.mxu2 %v332_v35  ;;  %399 = vmatpush.msra.mxu0 %v331_v37  ;;  %v354_v56 = vld [vmem:[%s1939_s2 + $0x118] sm:$0xff]  ;;  %v355_v58 = vld [vmem:[%s1939_s2 + $0x120] sm:$0xff]  ;;  %v320_v59 = vld [vmem:[%s1939_s2 + $0x8] sm:$0xff] }
  0x20   : > { %468 = vmatpush.msra.mxu3 %v364_v36  ;;  %421 = vmatpush.msra.mxu1 %v365_v38  ;;  %v352_v60 = vld [vmem:[%s1939_s2 + $0x108] sm:$0xff]  ;;  %v315_v61 = vld [vmem:[%s1402_s18] sm:$0xff]  ;;  %v353_v0 = vld [vmem:[%s1939_s2 + $0x110] sm:$0xff] }
  0x21   : > { %446 = vmatpush.msra.mxu2 %v330_v39  ;;  %400 = vmatpush.msra.mxu0 %v329_v41  ;;  %v316_v62 = vld [vmem:[%s1402_s18 + $0x8] sm:$0xff]  ;;  %v319_v63 = vld [vmem:[%s1939_s2] sm:$0xff]  ;;  %v517_v1 = vld [vmem:[%s1940_s3 + $0xf8] sm:$0xff] }
  0x22   : > { %469 = vmatpush.msra.mxu3 %v362_v40  ;;  %422 = vmatpush.msra.mxu1 %v363_v42  ;;  %v351_v2 = vld [vmem:[%s1939_s2 + $0x100] sm:$0xff]  ;;  %v516_v3 = vld [vmem:[%s1940_s3 + $0xf0] sm:$0xff]  ;;  %v515_v4 = vld [vmem:[%s1940_s3 + $0xe8] sm:$0xff] }
  0x23   : > { %447 = vmatpush.msra.mxu2 %v328_v43  ;;  %401 = vmatpush.msra.mxu0 %v327_v45  ;;  %v514_v5 = vld [vmem:[%s1940_s3 + $0xe0] sm:$0xff]  ;;  %v548_v6 = vld [vmem:[%s1940_s3 + $0x1f0] sm:$0xff]  ;;  %v549_v7 = vld [vmem:[%s1940_s3 + $0x1f8] sm:$0xff] }
  0x24   : > { %470 = vmatpush.msra.mxu3 %v360_v44  ;;  %423 = vmatpush.msra.mxu1 %v361_v46  ;;  %v513_v8 = vld [vmem:[%s1940_s3 + $0xd8] sm:$0xff]  ;;  %v512_v9 = vld [vmem:[%s1940_s3 + $0xd0] sm:$0xff]  ;;  %v546_v10 = vld [vmem:[%s1940_s3 + $0x1e0] sm:$0xff] }
  0x25   : > { %448 = vmatpush.msra.mxu2 %v326_v47  ;;  %402 = vmatpush.msra.mxu0 %v325_v49  ;;  %v317_v11 = vld [vmem:[%s1402_s18 + $0x10] sm:$0xff]  ;;  %v318_v12 = vld [vmem:[%s1402_s18 + $0x18] sm:$0xff]  ;;  %v547_v13 = vld [vmem:[%s1940_s3 + $0x1e8] sm:$0xff] }
  0x26   : > { %471 = vmatpush.msra.mxu3 %v358_v48  ;;  %424 = vmatpush.msra.mxu1 %v359_v50  ;;  %v510_v14 = vld [vmem:[%s1940_s3 + $0xc0] sm:$0xff]  ;;  %v544_v15 = vld [vmem:[%s1940_s3 + $0x1d0] sm:$0xff]  ;;  %v511_v16 = vld [vmem:[%s1940_s3 + $0xc8] sm:$0xff] }
  0x27   : > { %449 = vmatpush.msra.mxu2 %v324_v51  ;;  %403 = vmatpush.msra.mxu0 %v323_v53  ;;  %v545_v17 = vld [vmem:[%s1940_s3 + $0x1d8] sm:$0xff]  ;;  %v508_v18 = vld [vmem:[%s1940_s3 + $0xb0] sm:$0xff]  ;;  %v542_v19 = vld [vmem:[%s1940_s3 + $0x1c0] sm:$0xff] }
  0x28   : > { %472 = vmatpush.msra.mxu3 %v356_v52  ;;  %425 = vmatpush.msra.mxu1 %v357_v54  ;;  %v509_v20 = vld [vmem:[%s1940_s3 + $0xb8] sm:$0xff]  ;;  %v543_v21 = vld [vmem:[%s1940_s3 + $0x1c8] sm:$0xff]  ;;  %v506_v22 = vld [vmem:[%s1940_s3 + $0xa0] sm:$0xff] }
  0x29   : > { %450 = vmatpush.msra.mxu2 %v322_v55  ;;  %404 = vmatpush.msra.mxu0 %v321_v57  ;;  %v540_v23 = vld [vmem:[%s1940_s3 + $0x1b0] sm:$0xff]  ;;  %v507_v24 = vld [vmem:[%s1940_s3 + $0xa8] sm:$0xff]  ;;  %v541_v25 = vld [vmem:[%s1940_s3 + $0x1b8] sm:$0xff] }
  0x2a   : > { %473 = vmatpush.msra.mxu3 %v354_v56  ;;  %426 = vmatpush.msra.mxu1 %v355_v58  ;;  %v504_v26 = vld [vmem:[%s1940_s3 + $0x90] sm:$0xff]  ;;  %v538_v27 = vld [vmem:[%s1940_s3 + $0x1a0] sm:$0xff]  ;;  %v505_v28 = vld [vmem:[%s1940_s3 + $0x98] sm:$0xff] }
  0x2b   : > { %451 = vmatpush.msra.mxu2 %v320_v59  ;;  %405 = vmatpush.msra.mxu0 %v319_v63  ;;  %v539_v29 = vld [vmem:[%s1940_s3 + $0x1a8] sm:$0xff]  ;;  %v502_v30 = vld [vmem:[%s1940_s3 + $0x80] sm:$0xff]  ;;  %v536_v31 = vld [vmem:[%s1940_s3 + $0x190] sm:$0xff] }
  0x2c   : > { %474 = vmatpush.msra.mxu3 %v352_v60  ;;  %452 = vmatmul.f32.vlgmr.msra.gmra.mxu2 %v315_v61  ;;  %v503_v32 = vld [vmem:[%s1940_s3 + $0x88] sm:$0xff]  ;;  %v537_v33 = vld [vmem:[%s1940_s3 + $0x198] sm:$0xff]  ;;  %v500_v34 = vld [vmem:[%s1940_s3 + $0x70] sm:$0xff] }
  0x2d   : > { %475 = vmatmul.f32.vlgmr.msra.gmra.mxu3 %v316_v62  ;;  %427 = vmatpush.msra.mxu1 %v353_v0  ;;  %v534_v35 = vld [vmem:[%s1940_s3 + $0x180] sm:$0xff]  ;;  %v501_v36 = vld [vmem:[%s1940_s3 + $0x78] sm:$0xff]  ;;  %v535_v37 = vld [vmem:[%s1940_s3 + $0x188] sm:$0xff] }
  0x2e   : > { %406 = vmatmul.f32.vlgmr.msra.gmra.mxu0 %v315_v61  ;;  %602 = vmatpush.msrb.mxu2 %v517_v1  ;;  %v498_v38 = vld [vmem:[%s1940_s3 + $0x60] sm:$0xff]  ;;  %v532_v39 = vld [vmem:[%s1940_s3 + $0x170] sm:$0xff]  ;;  %v499_v40 = vld [vmem:[%s1940_s3 + $0x68] sm:$0xff] }
  0x2f   : > { %428 = vmatpush.msra.mxu1 %v351_v2  ;;  %556 = vmatpush.msrb.mxu0 %v516_v3  ;;  %v533_v41 = vld [vmem:[%s1940_s3 + $0x178] sm:$0xff]  ;;  %v496_v42 = vld [vmem:[%s1940_s3 + $0x50] sm:$0xff]  ;;  %v530_v43 = vld [vmem:[%s1940_s3 + $0x160] sm:$0xff] }
  0x30   : > { %429 = vmatmul.f32.vlgmr.msra.gmra.mxu1 %v316_v62  ;;  %603 = vmatpush.msrb.mxu2 %v515_v4  ;;  %v497_v44 = vld [vmem:[%s1940_s3 + $0x58] sm:$0xff]  ;;  %v531_v45 = vld [vmem:[%s1940_s3 + $0x168] sm:$0xff]  ;;  %v494_v46 = vld [vmem:[%s1940_s3 + $0x40] sm:$0xff] }
  0x31   : > { %557 = vmatpush.msrb.mxu0 %v514_v5  ;;  %579 = vmatpush.msrb.mxu1 %v548_v6  ;;  %v528_v47 = vld [vmem:[%s1940_s3 + $0x150] sm:$0xff]  ;;  %v495_v48 = vld [vmem:[%s1940_s3 + $0x48] sm:$0xff]  ;;  %v529_v49 = vld [vmem:[%s1940_s3 + $0x158] sm:$0xff] }
  0x32   : > { %625 = vmatpush.msrb.mxu3 %v549_v7  ;;  %604 = vmatpush.msrb.mxu2 %v513_v8  ;;  %v492_v50 = vld [vmem:[%s1940_s3 + $0x30] sm:$0xff]  ;;  %v526_v51 = vld [vmem:[%s1940_s3 + $0x140] sm:$0xff]  ;;  %v493_v52 = vld [vmem:[%s1940_s3 + $0x38] sm:$0xff] }
  0x33   : > { %558 = vmatpush.msrb.mxu0 %v512_v9  ;;  %580 = vmatpush.msrb.mxu1 %v546_v10  ;;  %v527_v53 = vld [vmem:[%s1940_s3 + $0x148] sm:$0xff]  ;;  %v490_v54 = vld [vmem:[%s1940_s3 + $0x20] sm:$0xff]  ;;  %v524_v55 = vld [vmem:[%s1940_s3 + $0x130] sm:$0xff] }
  0x34   : > { %455 = vmatmul.f32.gmra.mxu2 %v317_v11  ;;  %626 = vmatpush.msrb.mxu3 %v547_v13  ;;  %v491_v56 = vld [vmem:[%s1940_s3 + $0x28] sm:$0xff]  ;;  %v525_v57 = vld [vmem:[%s1940_s3 + $0x138] sm:$0xff]  ;;  %v488_v58 = vld [vmem:[%s1940_s3 + $0x10] sm:$0xff] }
  0x35   : > { %478 = vmatmul.f32.gmra.mxu3 %v318_v12  ;;  %559 = vmatpush.msrb.mxu0 %v510_v14  ;;  %v522_v59 = vld [vmem:[%s1940_s3 + $0x120] sm:$0xff]  ;;  %v489_v60 = vld [vmem:[%s1940_s3 + $0x18] sm:$0xff]  ;;  %v523_v61 = vld [vmem:[%s1940_s3 + $0x128] sm:$0xff] }
  0x36   : > { %409 = vmatmul.f32.gmra.mxu0 %v317_v11  ;;  %581 = vmatpush.msrb.mxu1 %v544_v15  ;;  %v486_v62 = vld [vmem:[%s1940_s3] sm:$0xff]  ;;  %v520_v63 = vld [vmem:[%s1940_s3 + $0x110] sm:$0xff]  ;;  %v487_v0 = vld [vmem:[%s1940_s3 + $0x8] sm:$0xff] }
  0x37   : > { %605 = vmatpush.msrb.mxu2 %v511_v16  ;;  %627 = vmatpush.msrb.mxu3 %v545_v17  ;;  %v521_v1 = vld [vmem:[%s1940_s3 + $0x118] sm:$0xff]  ;;  %v518_v2 = vld [vmem:[%s1940_s3 + $0x100] sm:$0xff]  ;;  %v519_v3 = vld [vmem:[%s1940_s3 + $0x108] sm:$0xff] }
  0x38   : > { %432 = vmatmul.f32.gmra.mxu1 %v318_v12  ;;  %560 = vmatpush.msrb.mxu0 %v508_v18  ;;  %v1046_v4 = vld [vmem:[%s1940_s3 + $0x2f0] sm:$0xff]  ;;  %v1047_v5 = vld [vmem:[%s1940_s3 + $0x2f8] sm:$0xff]  ;;  %v1044_v6 = vld [vmem:[%s1940_s3 + $0x2e0] sm:$0xff] }
  0x39   : > { %582 = vmatpush.msrb.mxu1 %v542_v19  ;;  %606 = vmatpush.msrb.mxu2 %v509_v20  ;;  %v1045_v7 = vld [vmem:[%s1940_s3 + $0x2e8] sm:$0xff]  ;;  %v1042_v8 = vld [vmem:[%s1940_s3 + $0x2d0] sm:$0xff]  ;;  %v1043_v9 = vld [vmem:[%s1940_s3 + $0x2d8] sm:$0xff] }
  0x3a   : > { %628 = vmatpush.msrb.mxu3 %v543_v21  ;;  %561 = vmatpush.msrb.mxu0 %v506_v22  ;;  %v1078_v10 = vld [vmem:[%s1940_s3 + $0x3f0] sm:$0xff]  ;;  %v1646_v11 = vld [vmem:[%s303_s27] sm:$0x77]  ;;  %v1079_v12 = vld [vmem:[%s1940_s3 + $0x3f8] sm:$0xff] }
  0x3b   : > { %583 = vmatpush.msrb.mxu1 %v540_v23  ;;  %607 = vmatpush.msrb.mxu2 %v507_v24  ;;  %v1076_v13 = vld [vmem:[%s1940_s3 + $0x3e0] sm:$0xff]  ;;  %v1041_v15 = vld [vmem:[%s1940_s3 + $0x2c8] sm:$0xff]  ;;  %v1074_v17 = vld [vmem:[%s1940_s3 + $0x3d0] sm:$0xff]  ;;  %v384_v19 = vperm.slane %v1646_v11, 0 }
  0x3c   : > { %629 = vmatpush.msrb.mxu3 %v541_v25  ;;  %562 = vmatpush.msrb.mxu0 %v504_v26  ;;  %v1040_v14 = vld [vmem:[%s1940_s3 + $0x2c0] sm:$0xff]  ;;  %v1077_v16 = vld [vmem:[%s1940_s3 + $0x3e8] sm:$0xff]  ;;  %v1075_v18 = vld [vmem:[%s1940_s3 + $0x3d8] sm:$0xff] }
  0x3d   : > { %584 = vmatpush.msrb.mxu1 %v538_v27  ;;  %608 = vmatpush.msrb.mxu2 %v505_v28  ;;  %v1038_v20 = vld [vmem:[%s1940_s3 + $0x2b0] sm:$0xff]  ;;  %v1039_v21 = vld [vmem:[%s1940_s3 + $0x2b8] sm:$0xff]  ;;  %v1072_v22 = vld [vmem:[%s1940_s3 + $0x3c0] sm:$0xff]  ;;  %v388_v28 = vperm.slane %v384_v19, 0 }
  0x3e   : > { %630 = vmatpush.msrb.mxu3 %v539_v29  ;;  %563 = vmatpush.msrb.mxu0 %v502_v30  ;;  %v1073_v23 = vld [vmem:[%s1940_s3 + $0x3c8] sm:$0xff]  ;;  %v1036_v24 = vld [vmem:[%s1940_s3 + $0x2a0] sm:$0xff]  ;;  %v1070_v26 = vld [vmem:[%s1940_s3 + $0x3b0] sm:$0xff]  ;;  %v385_v29 = vperm.slane %v1646_v11, 4 }
  0x3f   : > { %585 = vmatpush.msrb.mxu1 %v536_v31  ;;  %609 = vmatpush.msrb.mxu2 %v503_v32  ;;  %v1037_v25 = vld [vmem:[%s1940_s3 + $0x2a8] sm:$0xff]  ;;  %v1071_v27 = vld [vmem:[%s1940_s3 + $0x3b8] sm:$0xff]  ;;  %v1034_v30 = vld [vmem:[%s1940_s3 + $0x290] sm:$0xff] }
  0x40   : > { %631 = vmatpush.msrb.mxu3 %v537_v33  ;;  %564 = vmatpush.msrb.mxu0 %v500_v34  ;;  %v1035_v31 = vld [vmem:[%s1940_s3 + $0x298] sm:$0xff]  ;;  %v1068_v32 = vld [vmem:[%s1940_s3 + $0x3a0] sm:$0xff]  ;;  %v1069_v33 = vld [vmem:[%s1940_s3 + $0x3a8] sm:$0xff] }
  0x41   : > { %586 = vmatpush.msrb.mxu1 %v534_v35  ;;  %610 = vmatpush.msrb.mxu2 %v501_v36  ;;  %v1032_v34 = vld [vmem:[%s1940_s3 + $0x280] sm:$0xff]  ;;  %v1033_v35 = vld [vmem:[%s1940_s3 + $0x288] sm:$0xff] }
  0x42   : > { %632 = vmatpush.msrb.mxu3 %v535_v37  ;;  %565 = vmatpush.msrb.mxu0 %v498_v38  ;;  %v1066_v37 = vld [vmem:[%s1940_s3 + $0x390] sm:$0xff]  ;;  %v1067_v38 = vld [vmem:[%s1940_s3 + $0x398] sm:$0xff]  ;;  %v1057_v19 = vld [vmem:[%s1940_s3 + $0x348] sm:$0xff] }
  0x43   : > { %587 = vmatpush.msrb.mxu1 %v532_v39  ;;  %611 = vmatpush.msrb.mxu2 %v499_v40  ;;  %v389_v40 = vperm.slane %v385_v29, 0  ;;  %v1049_v29 = vld [vmem:[%s1940_s3 + $0x308] sm:$0xff] }
  0x44   : > { %633 = vmatpush.msrb.mxu3 %v533_v41  ;;  %566 = vmatpush.msrb.mxu0 %v496_v42  ;;  %v1030_v41 = vld [vmem:[%s1940_s3 + $0x270] sm:$0xff]  ;;  %v1031_v42 = vld [vmem:[%s1940_s3 + $0x278] sm:$0xff] }
  0x45   : > { %588 = vmatpush.msrb.mxu1 %v530_v43  ;;  %612 = vmatpush.msrb.mxu2 %v497_v44  ;;  %v1064_v44 = vld [vmem:[%s1940_s3 + $0x380] sm:$0xff] }
  0x46   : > { %634 = vmatpush.msrb.mxu3 %v531_v45  ;;  %567 = vmatpush.msrb.mxu0 %v494_v46  ;;  %v1065_v45 = vld [vmem:[%s1940_s3 + $0x388] sm:$0xff] }
  0x47   : > { %589 = vmatpush.msrb.mxu1 %v528_v47  ;;  %613 = vmatpush.msrb.mxu2 %v495_v48  ;;  %v1028_v47 = vld [vmem:[%s1940_s3 + $0x260] sm:$0xff]  ;;  %v1029_v48 = vld [vmem:[%s1940_s3 + $0x268] sm:$0xff] }
  0x48   : > { %635 = vmatpush.msrb.mxu3 %v529_v49  ;;  %568 = vmatpush.msrb.mxu0 %v492_v50 }
  0x49   : > { %590 = vmatpush.msrb.mxu1 %v526_v51  ;;  %614 = vmatpush.msrb.mxu2 %v493_v52 }
  0x4a   : > { %636 = vmatpush.msrb.mxu3 %v527_v53  ;;  %569 = vmatpush.msrb.mxu0 %v490_v54  ;;  %v1026_v53 = vld [vmem:[%s1940_s3 + $0x250] sm:$0xff]  ;;  %v1027_v54 = vld [vmem:[%s1940_s3 + $0x258] sm:$0xff] }
  0x4b   : > { %591 = vmatpush.msrb.mxu1 %v524_v55  ;;  %615 = vmatpush.msrb.mxu2 %v491_v56  ;;  %v1062_v55 = vld [vmem:[%s1940_s3 + $0x370] sm:$0xff]  ;;  %v1063_v56 = vld [vmem:[%s1940_s3 + $0x378] sm:$0xff] }
  0x4c   : > { %637 = vmatpush.msrb.mxu3 %v525_v57  ;;  %570 = vmatpush.msrb.mxu0 %v488_v58  ;;  %v1024_v58 = vld [vmem:[%s1940_s3 + $0x240] sm:$0xff] }
  0x4d   : > { %592 = vmatpush.msrb.mxu1 %v522_v59  ;;  %616 = vmatpush.msrb.mxu2 %v489_v60  ;;  %v1025_v59 = vld [vmem:[%s1940_s3 + $0x248] sm:$0xff] }
  0x4e   : > { %638 = vmatpush.msrb.mxu3 %v523_v61  ;;  %571 = vmatpush.msrb.mxu0 %v486_v62 }
  0x4f   : > { %593 = vmatpush.msrb.mxu1 %v520_v63  ;;  %617 = vmatpush.msrb.mxu2 %v487_v0 }
  0x50   : > { %639 = vmatpush.msrb.mxu3 %v521_v1  ;;  %723 = vmatpush.msra.mxu0 %v1046_v4 }
  0x51   : > { %594 = vmatpush.msrb.mxu1 %v518_v2  ;;  %769 = vmatpush.msra.mxu2 %v1047_v5 }
  0x52   : > { %640 = vmatpush.msrb.mxu3 %v519_v3  ;;  %724 = vmatpush.msra.mxu0 %v1044_v6 }
  0x53   : > { %770 = vmatpush.msra.mxu2 %v1045_v7  ;;  %746 = vmatpush.msra.mxu1 %v1078_v10  ;;  %v1022_v7 = vld [vmem:[%s1940_s3 + $0x230] sm:$0xff]  ;;  %v1061_v10 = vld [vmem:[%s1940_s3 + $0x368] sm:$0xff] }
  0x54   : > { %792 = vmatpush.msra.mxu3 %v1079_v12  ;;  %725 = vmatpush.msra.mxu0 %v1042_v8  ;;  %v1060_v8 = vld [vmem:[%s1940_s3 + $0x360] sm:$0xff] }
  0x55   : > { %771 = vmatpush.msra.mxu2 %v1043_v9  ;;  %747 = vmatpush.msra.mxu1 %v1076_v13  ;;  %v1023_v9 = vld [vmem:[%s1940_s3 + $0x238] sm:$0xff]  ;;  %v1020_v12 = vld [vmem:[%s1940_s3 + $0x220] sm:$0xff]  ;;  %v1058_v13 = vld [vmem:[%s1940_s3 + $0x350] sm:$0xff] }
  0x56   : > { %793 = vmatpush.msra.mxu3 %v1077_v16  ;;  %726 = vmatpush.msra.mxu0 %v1040_v14  ;;  %v1021_v14 = vld [vmem:[%s1940_s3 + $0x228] sm:$0xff]  ;;  %v1018_v16 = vld [vmem:[%s1940_s3 + $0x210] sm:$0xff] }
  0x57   : > { %772 = vmatpush.msra.mxu2 %v1041_v15  ;;  %748 = vmatpush.msra.mxu1 %v1074_v17  ;;  %v1059_v15 = vld [vmem:[%s1940_s3 + $0x358] sm:$0xff]  ;;  %v1056_v17 = vld [vmem:[%s1940_s3 + $0x340] sm:$0xff] }
  0x58   : > { %794 = vmatpush.msra.mxu3 %v1075_v18  ;;  %727 = vmatpush.msra.mxu0 %v1038_v20  ;;  %v1019_v18 = vld [vmem:[%s1940_s3 + $0x218] sm:$0xff]  ;;  %v1016_v20 = vld [vmem:[%s1940_s3 + $0x200] sm:$0xff] }
  0x59   : > { %773 = vmatpush.msra.mxu2 %v1039_v21  ;;  %749 = vmatpush.msra.mxu1 %v1072_v22  ;;  %v1054_v21 = vld [vmem:[%s1940_s3 + $0x330] sm:$0xff]  ;;  %v1017_v22 = vld [vmem:[%s1940_s3 + $0x208] sm:$0xff] }
  0x5a   : > { %795 = vmatpush.msra.mxu3 %v1073_v23  ;;  %728 = vmatpush.msra.mxu0 %v1036_v24  ;;  %v1055_v23 = vld [vmem:[%s1940_s3 + $0x338] sm:$0xff]  ;;  %v1052_v24 = vld [vmem:[%s1940_s3 + $0x320] sm:$0xff] }
  0x5b   : > { %774 = vmatpush.msra.mxu2 %v1037_v25  ;;  %750 = vmatpush.msra.mxu1 %v1070_v26  ;;  %v1053_v25 = vld [vmem:[%s1940_s3 + $0x328] sm:$0xff]  ;;  %v1050_v26 = vld [vmem:[%s1940_s3 + $0x310] sm:$0xff] }
  0x5c   : > { %796 = vmatpush.msra.mxu3 %v1071_v27  ;;  %729 = vmatpush.msra.mxu0 %v1034_v30  ;;  %v1051_v27 = vld [vmem:[%s1940_s3 + $0x318] sm:$0xff] }
  0x5d   : > { %775 = vmatpush.msra.mxu2 %v1035_v31  ;;  %751 = vmatpush.msra.mxu1 %v1068_v32  ;;  %v834_v30 = vld [vmem:[%s1941_s4 + $0x78] sm:$0xff]  ;;  %v833_v31 = vld [vmem:[%s1941_s4 + $0x70] sm:$0xff] }
  0x5e   : > { %797 = vmatpush.msra.mxu3 %v1069_v33  ;;  %730 = vmatpush.msra.mxu0 %v1032_v34  ;;  %v850_v32 = vld [vmem:[%s1941_s4 + $0xf8] sm:$0xff]  ;;  %v550_v33 = vperm.slane %v1646_v11, 1  ;;  %v832_v34 = vld [vmem:[%s1941_s4 + $0x68] sm:$0xff] }
  0x5f   : > { %776 = vmatpush.msra.mxu2 %v1033_v35  ;;  %752 = vmatpush.msra.mxu1 %v1066_v37  ;;  %v849_v35 = vld [vmem:[%s1941_s4 + $0xf0] sm:$0xff]  ;;  %v831_v37 = vld [vmem:[%s1941_s4 + $0x60] sm:$0xff] }
  0x60   : > { %798 = vmatpush.msra.mxu3 %v1067_v38  ;;  %731 = vmatpush.msra.mxu0 %v1030_v41  ;;  %v847_v38 = vld [vmem:[%s1941_s4 + $0xe0] sm:$0xff]  ;;  %v846_v41 = vld [vmem:[%s1941_s4 + $0xd8] sm:$0xff] }
  0x61   : > { %777 = vmatpush.msra.mxu2 %v1031_v42  ;;  %753 = vmatpush.msra.mxu1 %v1064_v44  ;;  %v551_v42 = vperm.slane %v1646_v11, 5 }
  0x62   : > { %799 = vmatpush.msra.mxu3 %v1065_v45  ;;  %732 = vmatpush.msra.mxu0 %v1028_v47  ;;  %v845_v45 = vld [vmem:[%s1941_s4 + $0xd0] sm:$0xff]  ;;  %v828_v47 = vld [vmem:[%s1941_s4 + $0x48] sm:$0xff] }
  0x63   : > { %778 = vmatpush.msra.mxu2 %v1029_v48  ;;  %754 = vmatpush.msra.mxu1 %v1062_v55  ;;  %v844_v48 = vld [vmem:[%s1941_s4 + $0xc8] sm:$0xff] }
  0x64   : > { %733 = vmatpush.msra.mxu0 %v1026_v53  ;;  %800 = vmatpush.msra.mxu3 %v1063_v56  ;;  %v826_v53 = vld [vmem:[%s1941_s4 + $0x38] sm:$0xff] }
  0x65   : > { %779 = vmatpush.msra.mxu2 %v1027_v54  ;;  %755 = vmatpush.msra.mxu1 %v1060_v8  ;;  %v843_v8 = vld [vmem:[%s1941_s4 + $0xc0] sm:$0xff] }
  0x66   : > { %734 = vmatpush.msra.mxu0 %v1024_v58  ;;  %801 = vmatpush.msra.mxu3 %v1061_v10  ;;  %v842_v10 = vld [vmem:[%s1941_s4 + $0xb8] sm:$0xff] }
  0x67   : > { %780 = vmatpush.msra.mxu2 %v1025_v59  ;;  %756 = vmatpush.msra.mxu1 %v1058_v13  ;;  %v841_v13 = vld [vmem:[%s1941_s4 + $0xb0] sm:$0xff] }
  0x68   : > { %735 = vmatpush.msra.mxu0 %v1022_v7  ;;  %802 = vmatpush.msra.mxu3 %v1059_v15  ;;  %v824_v7 = vld [vmem:[%s1941_s4 + $0x28] sm:$0xff] }
  0x69   : > { %781 = vmatpush.msra.mxu2 %v1023_v9  ;;  %757 = vmatpush.msra.mxu1 %v1056_v17  ;;  %v823_v9 = vld [vmem:[%s1941_s4 + $0x20] sm:$0xff]  ;;  %v840_v15 = vld [vmem:[%s1941_s4 + $0xa8] sm:$0xff] }
  0x6a   : > { %736 = vmatpush.msra.mxu0 %v1020_v12  ;;  %803 = vmatpush.msra.mxu3 %v1057_v19  ;;  %v822_v12 = vld [vmem:[%s1941_s4 + $0x18] sm:$0xff]  ;;  %v839_v17 = vld [vmem:[%s1941_s4 + $0xa0] sm:$0xff] }
  0x6b   : > { %782 = vmatpush.msra.mxu2 %v1021_v14  ;;  %758 = vmatpush.msra.mxu1 %v1054_v21  ;;  %v821_v14 = vld [vmem:[%s1941_s4 + $0x10] sm:$0xff]  ;;  %v838_v19 = vld [vmem:[%s1941_s4 + $0x98] sm:$0xff]  ;;  %v836_v21 = vld [vmem:[%s1941_s4 + $0x88] sm:$0xff] }
  0x6c   : > { %737 = vmatpush.msra.mxu0 %v1018_v16  ;;  %804 = vmatpush.msra.mxu3 %v1055_v23  ;;  %v820_v16 = vld [vmem:[%s1941_s4 + $0x8] sm:$0xff]  ;;  %v717_v23 = vperm.slane %v1646_v11, 2 }
  0x6d   : > { %783 = vmatpush.msra.mxu2 %v1019_v18  ;;  %759 = vmatpush.msra.mxu1 %v1052_v24  ;;  %v819_v18 = vld [vmem:[%s1941_s4] sm:$0xff] }
  0x6e   : > { %738 = vmatpush.msra.mxu0 %v1016_v20  ;;  %805 = vmatpush.msra.mxu3 %v1053_v25  ;;  %v837_v20 = vld [vmem:[%s1941_s4 + $0x90] sm:$0xff]  ;;  %v721_v25 = vperm.slane %v717_v23, 2 }
  0x6f   : > { %784 = vmatpush.msra.mxu2 %v1017_v22  ;;  %760 = vmatpush.msra.mxu1 %v1050_v26  ;;  %v835_v22 = vld [vmem:[%s1941_s4 + $0x80] sm:$0xff]  ;;  %v718_v26 = vperm.slane %v1646_v11, 6 }
  0x70   : > { %806 = vmatpush.msra.mxu3 %v1051_v27 }
  0x72   : > { %807 = vmatpush.msra.mxu3 %v1049_v29 }
  0xab   : > { %v407_v36 = vpop.f32.mrf.mxu0 }
  0xac   : > { %v408_v39 = vadd.f32 %v407_v36, %v388_v28  ;;  %v848_v36 = vld [vmem:[%s1941_s4 + $0xe8] sm:$0xff] }
  0xad   : > { %v430_v43 = vpop.f32.mrf.mxu1 }
  0xae   : > { %v431_v46 = vadd.f32 %v430_v43, %v408_v39  ;;  %v554_v39 = vperm.slane %v550_v33, 1  ;;  %v829_v43 = vld [vmem:[%s1941_s4 + $0x50] sm:$0xff] }
  0xaf   : > { %v453_v49 = vpop.f32.mrf.mxu2 }
  0xb0   : > { %v476_v50 = vpop.f32.mrf.mxu3  ;;  %v482_v51 = vmax.f32 %v431_v46, 0.0  ;;  %v454_v52 = vadd.f32 %v453_v49, %v389_v40  ;;  %v555_v49 = vperm.slane %v551_v42, 1 }
  0xb2   : > { %v477_v57 = vadd.f32 %v476_v50, %v454_v52  ;;  %572 = vmatmul.f32.vlgmr.msrb.gmra.mxu0 %v482_v51  ;;  %618 = vmatmul.f32.vlgmr.msrb.gmra.mxu2 %v482_v51  ;;  %v827_v50 = vld [vmem:[%s1941_s4 + $0x40] sm:$0xff] }
  0xb3   : > { %v410_v60 = vpop.f32.mrf.mxu0  ;;  %855 = vmatpush.msrb.mxu0 %v834_v30  ;;  %1085 = vmatpush.msrb.mxu2 %v834_v30 }
  0xb4   : > { %v483_v61 = vmax.f32 %v477_v57, 0.0  ;;  %v411_v62 = vadd.f32 %v410_v60, %v388_v28  ;;  %v1048_v28 = vld [vmem:[%s1940_s3 + $0x300] sm:$0xff]  ;;  %v825_v57 = vld [vmem:[%s1941_s4 + $0x30] sm:$0xff] }
  0xb5   : > { %v433_v63 = vpop.f32.mrf.mxu1  ;;  %761 = vmatpush.msra.mxu1 %v1048_v28  ;;  %856 = vmatpush.msrb.mxu0 %v833_v31 }
  0xb6   : > { %595 = vmatmul.f32.vlgmr.msrb.gmra.mxu1 %v483_v61  ;;  %641 = vmatmul.f32.vlgmr.msrb.gmra.mxu3 %v483_v61  ;;  %v434_v0 = vadd.f32 %v433_v63, %v411_v62 }
  0xb7   : > { %v456_v1 = vpop.f32.mrf.mxu2  ;;  %878 = vmatpush.msrb.mxu1 %v850_v32  ;;  %1101 = vmatpush.msrb.mxu3 %v850_v32 }
  0xb8   : > { %v479_v2 = vpop.f32.mrf.mxu3  ;;  %v484_v3 = vmax.f32 %v434_v0, 0.0  ;;  %v457_v4 = vadd.f32 %v456_v1, %v389_v40  ;;  %1086 = vmatpush.msrb.mxu2 %v833_v31  ;;  %857 = vmatpush.msrb.mxu0 %v832_v34  ;;  %v830_v40 = vld [vmem:[%s1941_s4 + $0x58] sm:$0xff]  ;;  %v722_v31 = vperm.slane %v718_v26, 2 }
  0xb9   : > { %879 = vmatpush.msrb.mxu1 %v849_v35  ;;  %1102 = vmatpush.msrb.mxu3 %v849_v35 }
  0xba   : > { %v480_v5 = vadd.f32 %v479_v2, %v457_v4  ;;  %575 = vmatmul.f32.gmra.mxu0 %v484_v3  ;;  %621 = vmatmul.f32.gmra.mxu2 %v484_v3 }
  0xbb   : > { %1087 = vmatpush.msrb.mxu2 %v832_v34  ;;  %880 = vmatpush.msrb.mxu1 %v848_v36 }
  0xbc   : > { %v485_v6 = vmax.f32 %v480_v5, 0.0  ;;  %1103 = vmatpush.msrb.mxu3 %v848_v36  ;;  %858 = vmatpush.msrb.mxu0 %v831_v37 }
  0xbd   : > { %1088 = vmatpush.msrb.mxu2 %v831_v37  ;;  %881 = vmatpush.msrb.mxu1 %v847_v38 }
  0xbe   : > { %598 = vmatmul.f32.gmra.mxu1 %v485_v6  ;;  %644 = vmatmul.f32.gmra.mxu3 %v485_v6 }
  0xbf   : > { %1104 = vmatpush.msrb.mxu3 %v847_v38  ;;  %859 = vmatpush.msrb.mxu0 %v830_v40 }
  0xc0   : > { %1089 = vmatpush.msrb.mxu2 %v830_v40  ;;  %882 = vmatpush.msrb.mxu1 %v846_v41 }
  0xc1   : > { %1105 = vmatpush.msrb.mxu3 %v846_v41  ;;  %860 = vmatpush.msrb.mxu0 %v829_v43 }
  0xc2   : > { %1090 = vmatpush.msrb.mxu2 %v829_v43  ;;  %883 = vmatpush.msrb.mxu1 %v845_v45 }
  0xc3   : > { %1106 = vmatpush.msrb.mxu3 %v845_v45  ;;  %861 = vmatpush.msrb.mxu0 %v828_v47 }
  0xc4   : > { %1091 = vmatpush.msrb.mxu2 %v828_v47  ;;  %884 = vmatpush.msrb.mxu1 %v844_v48 }
  0xc5   : > { %1107 = vmatpush.msrb.mxu3 %v844_v48  ;;  %862 = vmatpush.msrb.mxu0 %v827_v50 }
  0xc6   : > { %1092 = vmatpush.msrb.mxu2 %v827_v50  ;;  %885 = vmatpush.msrb.mxu1 %v843_v8 }
  0xc7   : > { %863 = vmatpush.msrb.mxu0 %v826_v53  ;;  %1108 = vmatpush.msrb.mxu3 %v843_v8 }
  0xc8   : > { %1093 = vmatpush.msrb.mxu2 %v826_v53  ;;  %886 = vmatpush.msrb.mxu1 %v842_v10 }
  0xc9   : > { %864 = vmatpush.msrb.mxu0 %v825_v57  ;;  %1109 = vmatpush.msrb.mxu3 %v842_v10 }
  0xca   : > { %1094 = vmatpush.msrb.mxu2 %v825_v57  ;;  %887 = vmatpush.msrb.mxu1 %v841_v13 }
  0xcb   : > { %865 = vmatpush.msrb.mxu0 %v824_v7  ;;  %1110 = vmatpush.msrb.mxu3 %v841_v13 }
  0xcc   : > { %1095 = vmatpush.msrb.mxu2 %v824_v7  ;;  %888 = vmatpush.msrb.mxu1 %v840_v15 }
  0xcd   : > { %866 = vmatpush.msrb.mxu0 %v823_v9  ;;  %1111 = vmatpush.msrb.mxu3 %v840_v15 }
  0xce   : > { %1096 = vmatpush.msrb.mxu2 %v823_v9  ;;  %889 = vmatpush.msrb.mxu1 %v839_v17 }
  0xcf   : > { %867 = vmatpush.msrb.mxu0 %v822_v12  ;;  %1112 = vmatpush.msrb.mxu3 %v839_v17 }
  0xd0   : > { %1097 = vmatpush.msrb.mxu2 %v822_v12  ;;  %890 = vmatpush.msrb.mxu1 %v838_v19 }
  0xd1   : > { %868 = vmatpush.msrb.mxu0 %v821_v14  ;;  %1113 = vmatpush.msrb.mxu3 %v838_v19 }
  0xd2   : > { %1098 = vmatpush.msrb.mxu2 %v821_v14  ;;  %891 = vmatpush.msrb.mxu1 %v837_v20 }
  0xd3   : > { %869 = vmatpush.msrb.mxu0 %v820_v16  ;;  %1114 = vmatpush.msrb.mxu3 %v837_v20 }
  0xd4   : > { %1099 = vmatpush.msrb.mxu2 %v820_v16  ;;  %892 = vmatpush.msrb.mxu1 %v836_v21 }
  0xd5   : > { %870 = vmatpush.msrb.mxu0 %v819_v18  ;;  %1115 = vmatpush.msrb.mxu3 %v836_v21 }
  0xd6   : > { %1100 = vmatpush.msrb.mxu2 %v819_v18  ;;  %893 = vmatpush.msrb.mxu1 %v835_v22 }
  0xd7   : > { %1116 = vmatpush.msrb.mxu3 %v835_v22 }
 0x12f   : > { %v573_v44 = vpop.f32.mrf.mxu0 }
 0x130   : > { %v574_v46 = vadd.f32 %v573_v44, %v554_v39 }
 0x133   : > { %v596_v51 = vpop.f32.mrf.mxu1 }
 0x134   : > { %v597_v52 = vadd.f32 %v596_v51, %v574_v46  ;;  %v1141_v46 = vld [vmem:[%s1942_s5] ss:$0 sm:$0xff] }
 0x135   : > { %v619_v54 = vpop.f32.mrf.mxu2 }
 0x136   : > { %v648_v55 = vmax.f32 %v597_v52, 0.0  ;;  %v620_v56 = vadd.f32 %v619_v54, %v555_v49 }
 0x137   : > { %v576_v58 = vpop.f32.mrf.mxu0 }
 0x138   : > { %739 = vmatmul.f32.vlgmr.msra.gmra.mxu0 %v648_v55  ;;  %785 = vmatmul.f32.vlgmr.msra.gmra.mxu2 %v648_v55  ;;  %v577_v59 = vadd.f32 %v576_v58, %v554_v39 }
 0x139   : > { %v642_v60 = vpop.f32.mrf.mxu3 }
 0x13a   : > { %v643_v61 = vadd.f32 %v642_v60, %v620_v56 }
 0x13b   : > { %v599_v62 = vpop.f32.mrf.mxu1 }
 0x13c   : > { %v649_v63 = vmax.f32 %v643_v61, 0.0  ;;  %v600_v0 = vadd.f32 %v599_v62, %v577_v59 }
 0x13d   : > { %v622_v1 = vpop.f32.mrf.mxu2 }
 0x13e   : > { %v650_v2 = vmax.f32 %v600_v0, 0.0  ;;  %762 = vmatmul.f32.vlgmr.msra.gmra.mxu1 %v649_v63  ;;  %808 = vmatmul.f32.vlgmr.msra.gmra.mxu3 %v649_v63  ;;  %v623_v3 = vadd.f32 %v622_v1, %v555_v49 }
 0x140   : > { %742 = vmatmul.f32.gmra.mxu0 %v650_v2  ;;  %788 = vmatmul.f32.gmra.mxu2 %v650_v2 }
 0x141   : > { %v645_v4 = vpop.f32.mrf.mxu3 }
 0x142   : > { %v646_v5 = vadd.f32 %v645_v4, %v623_v3 }
 0x144   : > { %v651_v6 = vmax.f32 %v646_v5, 0.0 }
 0x146   : > { %765 = vmatmul.f32.gmra.mxu1 %v651_v6  ;;  %811 = vmatmul.f32.gmra.mxu3 %v651_v6 }
 0x1b5   : > { %v740_v24 = vpop.f32.mrf.mxu0 }
 0x1b6   : > { %v741_v27 = vadd.f32 %v740_v24, %v721_v25 }
 0x1bb   : > { %v763_v28 = vpop.f32.mrf.mxu1  ;;  %v786_v29 = vpop.f32.mrf.mxu2 }
 0x1bc   : > { %v764_v30 = vadd.f32 %v763_v28, %v741_v27  ;;  %v787_v34 = vadd.f32 %v786_v29, %v722_v31 }
 0x1bd   : > { %v743_v33 = vpop.f32.mrf.mxu0 }
 0x1be   : > { %v815_v32 = vmax.f32 %v764_v30, 0.0  ;;  %v744_v36 = vadd.f32 %v743_v33, %v721_v25 }
 0x1c0   : > { %871 = vmatmul.f32.vlgmr.msrb.gmra.mxu0 %v815_v32 }
 0x1c1   : > { %v809_v35 = vpop.f32.mrf.mxu3 }
 0x1c2   : > { %v810_v37 = vadd.f32 %v809_v35, %v787_v34 }
 0x1c3   : > { %v766_v38 = vpop.f32.mrf.mxu1  ;;  %v789_v41 = vpop.f32.mrf.mxu2 }
 0x1c4   : > { %v816_v39 = vmax.f32 %v810_v37, 0.0  ;;  %v767_v40 = vadd.f32 %v766_v38, %v744_v36  ;;  %v790_v11 = vadd.f32 %v789_v41, %v722_v31 }
 0x1c6   : > { %v817_v42 = vmax.f32 %v767_v40, 0.0  ;;  %894 = vmatmul.f32.vlgmr.msrb.gmra.mxu1 %v816_v39 }
 0x1c8   : > { %874 = vmatmul.f32.vlgmr.msrb.gmra.mxu2 %v817_v42 }
 0x1c9   : > { %v812_v43 = vpop.f32.mrf.mxu3 }
 0x1ca   : > { %v813_v44 = vadd.f32 %v812_v43, %v790_v11 }
 0x1cc   : > { %v818_v45 = vmax.f32 %v813_v44, 0.0 }
 0x1ce   : > { %897 = vmatmul.f32.vlgmr.msrb.gmra.mxu3 %v818_v45 }
 0x23d   : > { %v872_v47 = vpop.f32.mrf.mxu0 }
 0x23e   : > { %v873_v48 = vadd.f32 %v1141_v46, %v872_v47 }
 0x243   : > { %v895_v49 = vpop.f32.mrf.mxu1 }
 0x244   : > { %v896_v50 = vadd.f32 %v895_v49, %v873_v48 }
 0x246   : > { %901 = vst [vmem:[%s312_s28] sm:$0xff] %v896_v50 }
 0x24b   : > { %v875_v51 = vpop.f32.mrf.mxu2 }
 0x24c   : > { %v876_v52 = vadd.f32 %v1141_v46, %v875_v51 }
 0x251   : > { %v898_v53 = vpop.f32.mrf.mxu3 }
 0x252   : > { %v899_v54 = vadd.f32 %v898_v53, %v876_v52 }
 0x254   : > { %902 = vst [vmem:[%s312_s28 + $0x8] sm:$0xff] %v899_v54 }
 0x255 PF: > { %s16_s23 = sadd.s32 1, %s1164_s23   ;;  %s1944_s21 = smov %s1160_s22 }
 0x256   : > { %p13_p5 = scmp.ge.s32.totalorder %s16_s23, 4   ;;  %s1945_s22 = smov %s1947_s24 }
 0x258   :  { %15 = sbr.rel (!%p13_p5) target bundleno = 2 (0x2), region = 78 }

</bundles_post_ra>
